<compile_context>
chip_gen: v7x
topology: tpu7x:2x2x1
jax: 0.10.0
libtpu: 0.0.40
codegen_flags: <defaults>
</compile_context>

<pallas_src>
import jax
import jax.numpy as jnp
from jax.experimental import pallas as pl
from jax.experimental.pallas import tpu as pltpu


# ---------------------------------------------------------------------------
# Kernel
# ---------------------------------------------------------------------------
def adder_cell_kernel(params_ref, x_ref, h_ref, out_ref, newh_ref):
    # params_ref: SMEM f32[5] = [w1, b1, w2, b2, w3]
    w1 = params_ref[0]
    b1 = params_ref[1]
    w2 = params_ref[2]
    b2 = params_ref[3]
    w3 = params_ref[4]

    bt = x_ref.shape[0]                      # static block sizes

    def compute_rows(row_slice):
        # (rows, S, dt) slab -> sublane (XLU) reduce over S -> (rows, dt)
        xs = jnp.sum(x_ref[row_slice, :, :].astype(jnp.float32), axis=1)
        s = xs + h_ref[row_slice, :].astype(jnp.float32)
        output = w1 * jnp.cos(jnp.pi * s) + b1                 # EUP cos + VPU fma
        newh_ref[row_slice, :] = (w3 * (s - output)).astype(newh_ref.dtype)
        out_ref[row_slice, :] = (w2 * output + b2).astype(out_ref.dtype)

    # Walk the block in 8-row (one sublane tile) slabs so the live set per
    # iteration stays bounded and never spills, even for multi-MiB blocks.
    # Small / ragged blocks (bt < 8 or bt not a multiple of 8) go single-shot.
    if bt % 8 == 0 and bt > 8:
        @pl.loop(0, bt // 8)
        def _(c):
            compute_rows(pl.ds(pl.multiple_of(c * 8, 8), 8))
    else:
        compute_rows(pl.ds(0, bt))
    # TODO(synk): for very large S where even an (8, S, dt) slab exceeds vregs,
    # add an inner accumulation loop over S-chunks.


# ---------------------------------------------------------------------------
# Tiling / VMEM planning
# ---------------------------------------------------------------------------
def _vmem_capacity_bytes():
    """Per-TensorCore VMEM capacity from hardware; conservative 64 MiB fallback."""
    try:
        cap = getattr(pltpu.get_tpu_info(), "vmem_capacity_bytes", None)
        if cap:
            return int(cap)
    except Exception:
        pass
    return 64 << 20          # v7x per-TC VMEM (smallest of the three generations)


def _pick_tiles(B, S, D, itemsize):
    """Choose (bt, dt), grid extents and an explicit VMEM limit.

    Per grid step the resident plan (double-buffered by the pipeline) is
        2 * (bt, S, dt) x   +   2 * (bt, dt) h   +   4 * (bt, dt) outputs
    """
    vmem_cap = _vmem_capacity_bytes()

    # ---- lane (D) tiling ---------------------------------------------------
    # Keep one 8-row reduction slab (8, S, dt) within ~48 vregs so the in-kernel
    # chunked reduce never spills; dt multiple of 128, >= 512 where possible so
    # strided DMA rows stay >= 2 KiB.
    dt = D
    if D % 128 == 0:
        slab_budget = 48 * 4096                                   # ~48 vregs
        max_dt = (slab_budget // (8 * S * itemsize)) // 128 * 128
        if 0 < max_dt < D:
            dt = max(min(D, 512), max_dt)

    # ---- batch (B) tiling ---------------------------------------------------
    total_budget = min(int(0.55 * vmem_cap), 48 << 20)
    per_row_bytes = dt * itemsize * (2 * S + 6)       # whole plan, per batch row
    x_row_bytes = S * dt * itemsize
    bt = max(1, min(total_budget // max(1, per_row_bytes),
                    (16 << 20) // max(1, x_row_bytes)))   # 8-16 MiB x-block sweet spot
    if bt >= B:
        bt = B
    else:
        bt = max(8, (bt // 8) * 8)

    # ---- guarantee >= 2 grid steps on medium+ problems ----------------------
    # (engages both v7x TensorCores; overlaps output writeback with next input DMA)
    total_x_bytes = B * S * D * itemsize
    if total_x_bytes > (1 << 20) and bt == B and pl.cdiv(D, dt) == 1:
        if B >= 16:
            bt = max(8, (pl.cdiv(B, 2) // 8) * 8)
        elif D % 128 == 0 and D >= 1024:
            dt = max(512, (D // 2) // 128 * 128)

    nb = pl.cdiv(B, bt)
    nd = pl.cdiv(D, dt)

    plan_bytes = bt * dt * itemsize * (2 * S + 6) + 1024
    vmem_limit = min(int(0.75 * vmem_cap), max(32 << 20, plan_bytes + (8 << 20)))
    return bt, dt, nb, nd, vmem_limit


# ---------------------------------------------------------------------------
# Wrapper
# ---------------------------------------------------------------------------
def adder_cell(x, h, params):
    """x: [B, S, D], h: [B, 1, D], params: f32[5].  Returns (output, new_h) [B, 1, D]."""
    B, S, D = x.shape
    assert h.shape == (B, 1, D)

    h2 = h.reshape(B, D).astype(x.dtype)              # lane-dense 2-D layout
    itemsize = jnp.dtype(x.dtype).itemsize
    bt, dt, nb, nd, vmem_limit = _pick_tiles(B, S, D, itemsize)

    cost = pl.CostEstimate(
        flops=B * S * D + 8 * B * D,
        transcendentals=B * D,
        bytes_accessed=B * S * D * itemsize + 3 * B * D * itemsize + 20,
    )

    out2, newh2 = pl.pallas_call(
        adder_cell_kernel,
        out_shape=(
            jax.ShapeDtypeStruct((B, D), x.dtype),    # output
            jax.ShapeDtypeStruct((B, D), x.dtype),    # new_h
        ),
        grid=(nb, nd),
        in_specs=[
            # scalar parameters -> SMEM, shared by every grid step
            pl.BlockSpec(memory_space=pltpu.MemorySpace.SMEM),
            # x: (bt, S, dt) block per grid step
            pl.BlockSpec((bt, S, dt), lambda b, d: (b, 0, d)),
            # h: matching dense (bt, dt) tile
            pl.BlockSpec((bt, dt), lambda b, d: (b, d)),
        ],
        out_specs=(
            pl.BlockSpec((bt, dt), lambda b, d: (b, d)),
            pl.BlockSpec((bt, dt), lambda b, d: (b, d)),
        ),
        compiler_params=pltpu.CompilerParams(
            dimension_semantics=("parallel", "parallel"),
            vmem_limit_bytes=int(vmem_limit),
        ),
        cost_estimate=cost,
    )(params, x, h2)

    return out2.reshape(B, 1, D), newh2.reshape(B, 1, D)


def make_params(final_result=True):
    # Deterministic parameter init, exactly as AdderCell.__init__:
    w1 = -0.5
    b1 = 0.5
    if final_result:
        w2, b2 = 2.0, -1.0
    else:
        w2, b2 = 1.0, 0.0
    w3 = 0.5
    return jnp.array([w1, b1, w2, b2, w3], dtype=jnp.float32)


def adder_cell_ref(x, h, params):
    # Pure-JAX reference mirroring the PyTorch forward.
    w1, b1, w2, b2, w3 = [params[i] for i in range(5)]
    xs = jnp.sum(x.astype(jnp.float32), axis=-2, keepdims=True)
    s = xs + h.astype(jnp.float32)
    output = w1 * jnp.cos(jnp.pi * s) + b1
    new_h = w3 * (s - output)
    output = w2 * output + b2
    return output.astype(x.dtype), new_h.astype(x.dtype)


if __name__ == "__main__":
    key = jax.random.PRNGKey(0)
    kx, kh = jax.random.split(key)
    params = make_params(final_result=True)

    # 1) Small single-step case (matches the module's typical tiny shapes).
    B, S, D = 2, 8, 128
    x = jax.random.normal(kx, (B, S, D), dtype=jnp.float32)
    h = jax.random.normal(kh, (B, 1, D), dtype=jnp.float32)
    out, new_h = adder_cell(x, h, params)
    jax.block_until_ready((out, new_h))
    out_ref, new_h_ref = adder_cell_ref(x, h, params)
    assert out.shape == (B, 1, D) and new_h.shape == (B, 1, D)
    assert jnp.allclose(out, out_ref, atol=1e-5, rtol=1e-5)
    assert jnp.allclose(new_h, new_h_ref, atol=1e-5, rtol=1e-5)

    # 2) Exercise the chunked in-kernel reduce (bt multiple of 8, single step).
    B2, S2, D2 = 64, 8, 256
    x2 = jax.random.normal(kx, (B2, S2, D2), dtype=jnp.float32)
    h2 = jax.random.normal(kh, (B2, 1, D2), dtype=jnp.float32)
    out2, nh2 = adder_cell(x2, h2, params)
    jax.block_until_ready((out2, nh2))
    o2r, nh2r = adder_cell_ref(x2, h2, params)
    assert jnp.allclose(out2, o2r, atol=1e-5, rtol=1e-5)
    assert jnp.allclose(nh2, nh2r, atol=1e-5, rtol=1e-5)

    # 3) Medium case: total x > 1 MiB -> forced multi-step grid (>=2 batch blocks).
    B3, S3, D3 = 128, 8, 512
    x3 = jax.random.normal(kx, (B3, S3, D3), dtype=jnp.float32)
    h3 = jax.random.normal(kh, (B3, 1, D3), dtype=jnp.float32)
    out3, nh3 = adder_cell(x3, h3, params)
    jax.block_until_ready((out3, nh3))
    o3r, nh3r = adder_cell_ref(x3, h3, params)
    assert jnp.allclose(out3, o3r, atol=1e-5, rtol=1e-5)
    assert jnp.allclose(nh3, nh3r, atol=1e-5, rtol=1e-5)

    print("KERNEL_OK")
</pallas_src>

<mosaic_0001>
module attributes {stable_mosaic.version = 11 : i64} {
  func.func @adder_cell_kernel(%arg0: i32, %arg1: i32, %arg2: memref<5xf32, #tpu.memory_space<smem>>, %arg3: memref<2x8x128xf32, #tpu.memory_space<vmem>>, %arg4: memref<2x128xf32, #tpu.memory_space<vmem>>, %arg5: memref<2x128xf32, #tpu.memory_space<vmem>>, %arg6: memref<2x128xf32, #tpu.memory_space<vmem>>) attributes {dimension_semantics = [#tpu.dimension_semantics<parallel>, #tpu.dimension_semantics<parallel>], iteration_bounds = array<i64: 1, 1>, scalar_prefetch = 0 : i64, scratch_operands = 0 : i64, tpu.core_type = #tpu.core_type<tc>, window_params = [{transform_indices = @transform_0, window_bounds = array<i64: 5>}, {transform_indices = @transform_1, window_bounds = array<i64: 2, 8, 128>}, {transform_indices = @transform_2, window_bounds = array<i64: 2, 128>}, {transform_indices = @transform_3, window_bounds = array<i64: 2, 128>}, {transform_indices = @transform_4, window_bounds = array<i64: 2, 128>}]} {
    %c0 = arith.constant 0 : index
    %0 = memref.load %arg2[%c0] : memref<5xf32, #tpu.memory_space<smem>>
    %c1 = arith.constant 1 : index
    %1 = memref.load %arg2[%c1] : memref<5xf32, #tpu.memory_space<smem>>
    %c2 = arith.constant 2 : index
    %2 = memref.load %arg2[%c2] : memref<5xf32, #tpu.memory_space<smem>>
    %c3 = arith.constant 3 : index
    %3 = memref.load %arg2[%c3] : memref<5xf32, #tpu.memory_space<smem>>
    %c4 = arith.constant 4 : index
    %4 = memref.load %arg2[%c4] : memref<5xf32, #tpu.memory_space<smem>>
    %c0_0 = arith.constant 0 : index
    %c0_1 = arith.constant 0 : index
    %c0_2 = arith.constant 0 : index
    %5 = vector.load %arg3[%c0_0, %c0_1, %c0_2] : memref<2x8x128xf32, #tpu.memory_space<vmem>>, vector<2x8x128xf32>
    %cst = arith.constant dense<0.000000e+00> : vector<2x128xf32>
    %6 = vector.multi_reduction <add>, %5, %cst [1] : vector<2x8x128xf32> to vector<2x128xf32>
    %c0_3 = arith.constant 0 : index
    %c0_4 = arith.constant 0 : index
    %7 = vector.load %arg4[%c0_3, %c0_4] : memref<2x128xf32, #tpu.memory_space<vmem>>, vector<2x128xf32>
    %8 = arith.addf %6, %7 : vector<2x128xf32>
    %cst_5 = arith.constant 3.14159274 : f32
    %9 = vector.broadcast %cst_5 : f32 to vector<2x128xf32>
    %10 = arith.mulf %9, %8 : vector<2x128xf32>
    %11 = math.cos %10 : vector<2x128xf32>
    %12 = vector.broadcast %0 : f32 to vector<2x128xf32>
    %13 = arith.mulf %12, %11 : vector<2x128xf32>
    %14 = vector.broadcast %1 : f32 to vector<2x128xf32>
    %15 = arith.addf %13, %14 : vector<2x128xf32>
    %16 = arith.subf %8, %15 : vector<2x128xf32>
    %17 = vector.broadcast %4 : f32 to vector<2x128xf32>
    %18 = arith.mulf %17, %16 : vector<2x128xf32>
    %c0_6 = arith.constant 0 : index
    %c0_7 = arith.constant 0 : index
    %19 = vector.load %arg6[%c0_6, %c0_7] : memref<2x128xf32, #tpu.memory_space<vmem>>, vector<2x128xf32>
    tpu.vector_store %arg6[%c0_6, %c0_7], %18 {strides = array<i32>} : memref<2x128xf32, #tpu.memory_space<vmem>>, vector<2x128xf32>,
    %20 = vector.broadcast %2 : f32 to vector<2x128xf32>
    %21 = arith.mulf %20, %15 : vector<2x128xf32>
    %22 = vector.broadcast %3 : f32 to vector<2x128xf32>
    %23 = arith.addf %21, %22 : vector<2x128xf32>
    %c0_8 = arith.constant 0 : index
    %c0_9 = arith.constant 0 : index
    %24 = vector.load %arg5[%c0_8, %c0_9] : memref<2x128xf32, #tpu.memory_space<vmem>>, vector<2x128xf32>
    tpu.vector_store %arg5[%c0_8, %c0_9], %23 {strides = array<i32>} : memref<2x128xf32, #tpu.memory_space<vmem>>, vector<2x128xf32>,
    return
  }
  func.func @transform_0(%arg0: i32, %arg1: i32) -> i32 {
    %c0_i32 = arith.constant 0 : i32
    %c0_i32_0 = arith.constant 0 : i32
    return %c0_i32 : i32
  }
  func.func @transform_1(%arg0: i32, %arg1: i32) -> (i32, i32, i32) {
    %c0_i32 = arith.constant 0 : i32
    %c0_i32_0 = arith.constant 0 : i32
    return %arg0, %c0_i32, %arg1 : i32, i32, i32
  }
  func.func @transform_2(%arg0: i32, %arg1: i32) -> (i32, i32) {
    %c0_i32 = arith.constant 0 : i32
    return %arg0, %arg1 : i32, i32
  }
  func.func @transform_3(%arg0: i32, %arg1: i32) -> (i32, i32) {
    %c0_i32 = arith.constant 0 : i32
    return %arg0, %arg1 : i32, i32
  }
  func.func @transform_4(%arg0: i32, %arg1: i32) -> (i32, i32) {
    %c0_i32 = arith.constant 0 : i32
    return %arg0, %arg1 : i32, i32
  }
}

</mosaic_0001>

<bundles_post_ra>
// kernel: tpu_custom_call.1
= control target key start
LH: loop header
LB: loop body
LE: loop exit
PB: predicated region body
PF: predicated region fallthrough
CT: control target
= control target key end

     0   :  { %10 = vsyncpa [#allocation5], 0  ;;  %s646_s0 = inlined_call_operand.hbm [shape: f32[5], index: 0, kind: input, shape index: {}]   ;;  %s647_s1 = inlined_call_operand.hbm [shape: f32[2,8,128], index: 1, kind: input, shape index: {}]   ;;  %s648_s2 = inlined_call_operand.vmem [shape: f32[2,128], index: 2, kind: input, shape index: {}]   ;;  %s649_s3 = inlined_call_operand.hbm [shape: f32[2,128], index: 3, kind: output, shape index: {0}]   ;;  %s650_s4 = inlined_call_operand.hbm [shape: f32[2,128], index: 4, kind: output, shape index: {1}]  }
   0x1   :  { %11 = vsyncpa [#allocation3], 0 }
   0x2   :  { %12 = vsyncpa [#allocation4], 0 }
   0x3   :  { %13 = vsyncpa [#allocation9], 0  ;;  %s377_s17 = scalar_lea.hbm %s646_s0, 16 }
   0x4   :  { %p378_p0 = scmp.ne.s32.totalorder %s646_s0, %s377_s17  ;;  %p381_p1 = scmp.lt.u32.totalorder %s377_s17, %s646_s0 }
   0x6   :  { %p383_p2 = pnand %p381_p1, %p378_p0 }
   0x8   :  { %386 = shalt.err (!%p383_p2)
}
   0x9   :  { %s461_s22 = smov [#allocation2]   ;;  %s462_s25 = smov [#allocation6]  }
   0xa   :  { %21 = dma.hbm_to_smem %s646_s0, 16, %s461_s22, [#allocation5]  }
   0xb   :  { %s27_s26 = sshll.u32 %s462_s25, 4  ;;  %s387_s29 = scalar_lea.hbm %s647_s1, 256  ;;  %s28_s26 = int_to_ptr.vmem [resolvable:$true] %s27_s26 }
   0xc   :  { %p388_p3 = scmp.ne.s32.totalorder %s647_s1, %s387_s29  ;;  %p391_p4 = scmp.lt.u32.totalorder %s387_s29, %s647_s1 }
   0xe   :  { %p393_p5 = pnand %p391_p4, %p388_p3 }
  0x10   :  { %396 = shalt.err (!%p393_p5)
}
  0x11   :  { %s397_s8 = scalar_lea.vmem %s28_s26, 256  ;;  %p402_p7 = scmp.lt.s32.totalorder %s28_s26, %s28_s26 }
  0x12   :  { %p398_p6 = scmp.ne.s32.totalorder %s28_s26, %s397_s8  ;;  %p403_p8 = scmp.lt.s32.totalorder %s397_s8, %s397_s8 }
  0x14   :  { %p404_p9 = por %p403_p8, %p402_p7 }
  0x16   :  { %p405_p10 = pnand %p404_p9, %p398_p6 }
  0x18   :  { %408 = shalt.err (!%p405_p10)
}
  0x19   :  { %s463_s0 = smov 128   ;;  %s464_s9 = smov 8  }
  0x1a   :  { %33 = dma.hbm_to_vmem [thread:$0]  %s647_s1, 256, %s28_s26, [#allocation3], %s463_s0, %s463_s0, %s464_s9  }
  0x1b   :  { %453 = dma.done.wait [#allocation5], 16  }
  0x1c   :  { %454 = vsyncadd [#allocation5], 4294967280 }
  0x1d   :  { %455 = dma.done.wait [#allocation3], 256  }
  0x1e   :  { %456 = vsyncadd [#allocation3], 4294967040 }
  0x1f   :  { %42 = sfence }
  0x20   :  { %v48_v0 = vld [vmem:[#allocation6] sm:$0xff]  ;;  %v49_v1 = vld [vmem:[#allocation6 + $0x8] sm:$0xff]  ;;  %v62_v8 = vld [vmem:[%s648_s2] sm:$0x3]  ;;  %v465_v42 = vmov 683565275  }
  0x21   :  { %v50_v2 = vrot.slane %v48_v0, 4  ;;  %v56_v3 = vrot.slane %v49_v1, 4  ;;  %v64_v13 = vrot.slane %v62_v8, 1  ;;  %v466_v44 = vmov 2475754826   ;;  %s613_s1 = sld [smem:[#allocation2]] }
  0x22   :  { %v467_v46 = vmov 2131351028   ;;  %v468_v48 = vmov 2102212464   ;;  %v469_v50 = vmov 920167782  }
  0x23   :  { %v51_v4 = vadd.f32 %v50_v2, %v48_v0  ;;  %v57_v5 = vadd.f32 %v56_v3, %v49_v1  ;;  %v470_v58 = vmov 1326507024   ;;  %s337_s2 = sld [smem:[#allocation2 + $0x1]]  ;;  %s338_s14 = sld [smem:[#allocation2 + $0x2]] }
  0x24   :  { %s339_s15 = sld [smem:[#allocation2 + $0x3]]  ;;  %s340_s16 = sld [smem:[#allocation2 + $0x4]] }
  0x25   :  { %v52_v6 = vrot.slane %v51_v4, 2  ;;  %v58_v7 = vrot.slane %v57_v5, 2  ;;  %s471_s17 = smov [#allocation7]   ;;  %s472_s19 = smov [#allocation8]  }
  0x26   :  { %s313_s18 = sshll.u32 %s471_s17, 4  ;;  %s323_s20 = sshll.u32 %s472_s19, 4  ;;  %s314_s18 = int_to_ptr.vmem [resolvable:$true] %s313_s18  ;;  %s324_s20 = int_to_ptr.vmem [resolvable:$true] %s323_s20 }
  0x27   :  { %v53_v9 = vadd.f32 %v52_v6, %v51_v4  ;;  %v59_v10 = vadd.f32 %v58_v7, %v57_v5  ;;  %s409_s21 = scalar_lea.vmem %s314_s18, 32  ;;  %p414_p12 = scmp.lt.s32.totalorder %s314_s18, %s314_s18 }
  0x28   :  { %p410_p11 = scmp.ne.s32.totalorder %s314_s18, %s409_s21  ;;  %p415_p13 = scmp.lt.s32.totalorder %s409_s21, %s409_s21 }
  0x29   :  { %v54_v11 = vrot.slane %v53_v9, 1  ;;  %v60_v12 = vrot.slane %v59_v10, 1 }
  0x2a   :  { %p416_p0 = por %p415_p13, %p414_p12 }
  0x2b   :  { %v55_v14 = vadd.f32 %v54_v11, %v53_v9  ;;  %v61_v15 = vadd.f32 %v60_v12, %v59_v10 }
  0x2c   :  { %p417_p1 = pnand %p416_p0, %p410_p11 }
  0x2d   :  { %v525_v16 = vadd.f32 %v62_v8, %v55_v14  ;;  %v527_v17 = vadd.f32 %v64_v13, %v61_v15 }
  0x2f   :  { %v530_v18 = vmul.f32 3.1415927, %v525_v16  ;;  %v533_v19 = vmul.f32 3.1415927, %v527_v17 }
  0x31   :  { %v71_v20 = vand.u32 2147483647, %v530_v18  ;;  %v74_v21 = vand.u32 2139095040, %v530_v18  ;;  %v174_v22 = vand.u32 2147483647, %v533_v19  ;;  %v177_v23 = vand.u32 2139095040, %v533_v19 }
  0x32   :  { %vm73_vm14 = vcmp.lt.s32.totalorder %v530_v18, 0 }
  0x33   :  { %v75_v24 = vshrl.u32 %v74_v21, 23  ;;  %v78_v25 = vand.u32 8388607, %v71_v20  ;;  %v178_v26 = vshrl.u32 %v177_v23, 23  ;;  %v181_v27 = vand.u32 8388607, %v174_v22 }
  0x34   :  { %vm594_vm15 = vcmp.le.f32.partialorder %v71_v20, 0.7853982 }
  0x35   :  { %v341_v28 = vadd.s32 4294967169, %v75_v24  ;;  %v345_v29 = vadd.s32 4294967169, %v178_v26  ;;  %v79_v31 = vor.u32 8388608, %v78_v25  ;;  %v182_v32 = vor.u32 8388608, %v181_v27 }
  0x37   :  { %v81_v30 = vadd.s32 1, %v341_v28  ;;  %v184_v33 = vadd.s32 1, %v345_v29  ;;  %v543_v38 = vshll.u32 %v79_v31, 8  ;;  %v545_v40 = vshll.u32 %v182_v32, 8 }
  0x39   :  { %vm82_vm0 = vcmp.gt.s32.totalorder %v81_v30, 0  ;;  %vm185_vm1 = vcmp.gt.s32.totalorder %v184_v33, 0 }
  0x3a   :  { %v83_v34 = vsel %vm82_vm0, %v81_v30, 0  ;;  %v186_v37 = vsel %vm185_vm1, %v184_v33, 0  ;;  %vm176_vm0 = vcmp.lt.s32.totalorder %v533_v19, 0  ;;  %vm606_vm1 = vcmp.le.f32.partialorder %v174_v22, 0.7853982 }
  0x3b   :  { %v84_v35 = vshrl.u32 %v83_v34, 5  ;;  %v85_v36 = vand.u32 31, %v83_v34  ;;  %v188_v39 = vand.u32 31, %v186_v37  ;;  %v547_v52 = vshrl.u32 %v186_v37, 5 }
  0x3d   :  { %v86_v41 = vsub.s32 32, %v85_v36  ;;  %v88_v43 = vshll.u32 %v465_v42, %v85_v36  ;;  %v91_v45 = vshll.u32 %v466_v44, %v85_v36  ;;  %v94_v47 = vshll.u32 %v467_v46, %v85_v36 }
  0x3e   :  { %v97_v49 = vshll.u32 %v468_v48, %v85_v36  ;;  %v100_v51 = vshll.u32 %v469_v50, %v85_v36  ;;  %vm103_vm2 = vcmp.lt.s32.totalorder %v84_v35, 1  ;;  %vm104_vm3 = vcmp.lt.s32.totalorder %v84_v35, 2 }
  0x3f   :  { %v87_v53 = vshrl.u32 %v465_v42, %v86_v41  ;;  %v89_v54 = vshrl.u32 %v466_v44, %v86_v41  ;;  %v92_v55 = vshrl.u32 %v467_v46, %v86_v41  ;;  %v95_v56 = vshrl.u32 %v468_v48, %v86_v41 }
  0x40   :  { %v98_v57 = vshrl.u32 %v469_v50, %v86_v41  ;;  %v101_v59 = vshrl.u32 %v470_v58, %v86_v41  ;;  %vm106_vm4 = vcmp.lt.s32.totalorder %v84_v35, 4  ;;  %v189_v63 = vsub.s32 32, %v188_v39 }
  0x41   :  { %v90_v60 = vor.u32 %v89_v54, %v88_v43  ;;  %v93_v61 = vor.u32 %v92_v55, %v91_v45  ;;  %v96_v62 = vor.u32 %v95_v56, %v94_v47  ;;  %vm105_vm5 = vcmp.lt.s32.totalorder %v84_v35, 3 }
  0x42   :  { %v99_v0 = vor.u32 %v98_v57, %v97_v49  ;;  %v102_v1 = vor.u32 %v101_v59, %v100_v51  ;;  %v191_v2 = vshll.u32 %v465_v42, %v188_v39  ;;  %v194_v10 = vshll.u32 %v466_v44, %v188_v39 }
  0x43   :  { %v107_v3 = vsel %vm103_vm2, %v87_v53, %v90_v60  ;;  %v108_v4 = vsel %vm106_vm4, %v96_v62, 2102212464  ;;  %v111_v5 = vsel %vm103_vm2, %v90_v60, %v93_v61  ;;  %v115_v6 = vsel %vm103_vm2, %v93_v61, %v96_v62 }
  0x44   :  { %v109_v7 = vsel %vm105_vm5, %v93_v61, %v108_v4  ;;  %v112_v8 = vsel %vm106_vm4, %v99_v0, 920167782  ;;  %v116_v9 = vsel %vm106_vm4, %v102_v1, 1326507024  ;;  %v190_v13 = vshrl.u32 %v465_v42, %v189_v63 }
  0x45   :  { %v113_v11 = vsel %vm105_vm5, %v96_v62, %v112_v8  ;;  %v117_v12 = vsel %vm105_vm5, %v99_v0, %v116_v9  ;;  %v192_v14 = vshrl.u32 %v466_v44, %v189_v63  ;;  %v110_v15 = vsel %vm104_vm3, %v107_v3, %v109_v7 }
  0x46   :  { %v114_v21 = vsel %vm104_vm3, %v111_v5, %v113_v11  ;;  %v118_v23 = vsel %vm104_vm3, %v115_v6, %v117_v12  ;;  %v195_v24 = vshrl.u32 %v467_v46, %v189_v63  ;;  %v197_v31 = vshll.u32 %v467_v46, %v188_v39 }
  0x47   :  { %v556_v25 = vmul.u32.u64.low %v543_v38, %v118_v23  ;;  %v557_v26 = vmul.u32.u64.high %v543_v38, %v118_v23, %v556_v25  ;;  %v560_v27 = vmul.u32.u64.low %v543_v38, %v114_v21  ;;  %v561_v28 = vmul.u32.u64.high %v543_v38, %v114_v21, %v560_v27 }
  0x48   :  { %v193_v29 = vor.u32 %v192_v14, %v191_v2  ;;  %v196_v30 = vor.u32 %v195_v24, %v194_v10  ;;  %v198_v32 = vshrl.u32 %v468_v48, %v189_v63  ;;  %v200_v33 = vshll.u32 %v468_v48, %v188_v39 }
  0x49   :  { %v201_v34 = vshrl.u32 %v469_v50, %v189_v63  ;;  %v203_v36 = vshll.u32 %v469_v50, %v188_v39  ;;  %v204_v37 = vshrl.u32 %v470_v58, %v189_v63  ;;  %v126_v35 = vmul.u32 %v543_v38, %v110_v15 }
  0x4a   :  { %v199_v41 = vor.u32 %v198_v32, %v197_v31  ;;  %vm206_vm6 = vcmp.lt.s32.totalorder %v547_v52, 1  ;;  %vm207_vm7 = vcmp.lt.s32.totalorder %v547_v52, 2  ;;  %vm128_vm8 = vc.u32 %v557_v26, %v560_v27 }
  0x4b   :  { %v129_v42 = vadd.s32 1, %v561_v28  ;;  %v202_v43 = vor.u32 %v201_v34, %v200_v33  ;;  %vm208_vm9 = vcmp.lt.s32.totalorder %v547_v52, 3  ;;  %v205_v44 = vor.u32 %v204_v37, %v203_v36 }
  0x4c   :  { %vm209_vm10 = vcmp.lt.s32.totalorder %v547_v52, 4  ;;  %v210_v45 = vsel %vm206_vm6, %v190_v13, %v193_v29  ;;  %v214_v39 = vsel %vm206_vm6, %v193_v29, %v196_v30  ;;  %v218_v48 = vsel %vm206_vm6, %v196_v30, %v199_v41 }
  0x4d   :  { %v130_v46 = vsel %vm128_vm8, %v129_v42, %v561_v28  ;;  %v211_v38 = vsel %vm209_vm10, %v199_v41, 2102212464  ;;  %v215_v47 = vsel %vm209_vm10, %v202_v43, 920167782  ;;  %v219_v53 = vsel %vm209_vm10, %v205_v44, 1326507024 }
  0x4e   :  { %v131_v49 = vadd.s32 %v130_v46, %v126_v35  ;;  %v212_v50 = vsel %vm208_vm9, %v196_v30, %v211_v38  ;;  %v216_v51 = vsel %vm208_vm9, %v199_v41, %v215_v47  ;;  %v220_v56 = vsel %vm208_vm9, %v202_v43, %v219_v53 }
  0x4f   :  { %v213_v54 = vsel %vm207_vm7, %v210_v45, %v212_v50  ;;  %v217_v55 = vsel %vm207_vm7, %v214_v39, %v216_v51  ;;  %v221_v58 = vsel %vm207_vm7, %v218_v48, %v220_v56  ;;  %v127_v13 = vadd.s32 %v560_v27, %v557_v26 }
  0x50   :  { %v132_v57 = vadd.s32 536870912, %v131_v49  ;;  %v578_v59 = vmul.u32.u64.low %v545_v40, %v217_v55  ;;  %v579_v60 = vmul.u32.u64.high %v545_v40, %v217_v55, %v578_v59  ;;  %v229_v0 = vmul.u32 %v545_v40, %v213_v54 }
  0x51   :  { %v582_v61 = vmul.u32.u64.low %v545_v40, %v221_v58  ;;  %v583_v62 = vmul.u32.u64.high %v545_v40, %v221_v58, %v582_v61  ;;  %vm163_vm5 = vweird.f32 %v530_v18  ;;  %vm266_vm9 = vweird.f32 %v533_v19 }
  0x52   :  { %v133_v63 = vshrl.u32 %v132_v57, 30  ;;  %v232_v2 = vadd.s32 1, %v579_v60  ;;  %vm291_vm10 = vcmask 1041409  }
  0x53   :  { %vm231_vm11 = vc.u32 %v583_v62, %v578_v59  ;;  %v230_v36 = vadd.s32 %v578_v59, %v583_v62 }
  0x54   :  { %v134_v1 = vshll.u32 %v133_v63, 30  ;;  %v233_v52 = vsel %vm231_vm11, %v232_v2, %v579_v60  ;;  %v157_v46 = vsub.s32 4, %v133_v63 }
  0x55   :  { %v234_v4 = vadd.s32 %v233_v52, %v229_v0 }
  0x56   :  { %v135_v3 = vsub.s32 %v131_v49, %v134_v1  ;;  %v158_v53 = vsel %vm73_vm14, %v157_v46, %v133_v63 }
  0x57   :  { %v235_v6 = vadd.s32 536870912, %v234_v4  ;;  %v160_v20 = vsel %vm594_vm15, 0, %v158_v53 }
  0x58   :  { %v137_v5 = vsub.s32 0, %v135_v3  ;;  %v164_v59 = vand.u32 3, %v160_v20 }
  0x59   :  { %v236_v8 = vshrl.u32 %v235_v6, 30 }
  0x5a   :  { %v342_v7 = vmin.u32 %v137_v5, %v135_v3  ;;  %vm169_vm2 = vcmp.eq.s32.totalorder %v164_v59, 2  ;;  %vm166_vm3 = vcmp.eq.s32.totalorder %v164_v59, 0  ;;  %vm165_vm4 = vcmp.lt.s32.totalorder %v164_v59, 2 }
  0x5b   :  { %v237_v10 = vshll.u32 %v236_v8, 30  ;;  %v260_v58 = vsub.s32 4, %v236_v8 }
  0x5c   :  { %v139_v9 = vclz %v342_v7 }
  0x5d   :  { %v238_v12 = vsub.s32 %v234_v4, %v237_v10  ;;  %v261_v62 = vsel %vm176_vm0, %v260_v58, %v236_v8  ;;  %v277_v8 = vstv %s613_s1 }
  0x5e   :  { %v343_v11 = vadd.s32 4294967294, %v139_v9  ;;  %v263_v2 = vsel %vm606_vm1, 0, %v261_v62 }
  0x5f   :  { %v240_v14 = vsub.s32 0, %v238_v12  ;;  %v267_v5 = vand.u32 3, %v263_v2 }
  0x60   :  { %vm344_vm12 = vcmp.lt.s32.totalorder %v343_v11, 0 }
  0x61   :  { %v142_v40 = vsel %vm344_vm12, 0, %v343_v11  ;;  %v346_v24 = vmin.u32 %v240_v14, %v238_v12  ;;  %vm272_vm6 = vcmp.eq.s32.totalorder %v267_v5, 2  ;;  %vm269_vm7 = vcmp.eq.s32.totalorder %v267_v5, 0 }
  0x62   :  { %v143_v15 = vsub.s32 32, %v142_v40  ;;  %v144_v21 = vshll.u32 %v135_v3, %v142_v40  ;;  %v147_v23 = vsub.s32 4294967266, %v142_v40  ;;  %vm268_vm8 = vcmp.lt.s32.totalorder %v267_v5, 2 }
  0x63   :  { %v242_v29 = vclz %v346_v24  ;;  %v280_v40 = vstv %s337_s2  ;;  %v295_v24 = vstv %s338_s14 }
  0x64   :  { %v145_v25 = vshrl.u32 %v127_v13, %v143_v15  ;;  %v148_v28 = vadd.s32 127, %v147_v23 }
  0x65   :  { %v347_v32 = vadd.s32 4294967294, %v242_v29 }
  0x66   :  { %v146_v30 = vor.u32 %v145_v25, %v144_v21  ;;  %v149_v31 = vshll.u32 %v148_v28, 23 }
  0x67   :  { %vm348_vm13 = vcmp.lt.s32.totalorder %v347_v32, 0 }
  0x68   :  { %v150_v33 = vor.u32 4788187, %v149_v31  ;;  %v153_v34 = vcvt.s32.f32 %v146_v30  ;;  %v245_v26 = vsel %vm348_vm13, 0, %v347_v32  ;;  %v285_v30 = vstv %s340_s16 }
  0x69   :  { %v246_v27 = vsub.s32 32, %v245_v26  ;;  %v247_v35 = vshll.u32 %v238_v12, %v245_v26  ;;  %v250_v41 = vsub.s32 4294967266, %v245_v26  ;;  %v298_v31 = vstv %s339_s15 }
  0x6a   :  { %v151_v37 = vand.u32 2147483647, %v150_v33 }
  0x6b   :  { %v248_v43 = vshrl.u32 %v230_v36, %v246_v27  ;;  %v251_v44 = vadd.s32 127, %v250_v41 }
  0x6c   :  { %v154_v42 = vmul.f32 %v153_v34, %v151_v37 }
  0x6d   :  { %v249_v38 = vor.u32 %v248_v43, %v247_v35  ;;  %v252_v47 = vshll.u32 %v251_v44, 23 }
  0x6e   :  { %v155_v39 = vxor.u32 2147483648, %v154_v42 }
  0x6f   :  { %v253_v50 = vor.u32 4788187, %v252_v47  ;;  %v256_v51 = vcvt.s32.f32 %v249_v38 }
  0x70   :  { %v156_v48 = vsel %vm73_vm14, %v155_v39, %v154_v42 }
  0x71   :  { %v159_v49 = vsel %vm594_vm15, %v530_v18, %v156_v48  ;;  %v254_v54 = vand.u32 2147483647, %v253_v50 }
  0x72   :  { %369 = vcosq.f32 %v159_v49 }
  0x73   :  { %371 = vsinq.f32 %v159_v49  ;;  %v257_v55 = vmul.f32 %v256_v51, %v254_v54 }
  0x75   :  { %v258_v57 = vxor.u32 2147483648, %v257_v55 }
  0x77   :  { %v259_v60 = vsel %vm176_vm0, %v258_v57, %v257_v55 }
  0x78   :  { %v262_v61 = vsel %vm606_vm1, %v533_v19, %v259_v60 }
  0x79   :  { %373 = vcosq.f32 %v262_v61 }
  0x7a   :  { %375 = vsinq.f32 %v262_v61 }
  0x7c   :  { %v370_v63 = vpop.eup %369 }
  0x7d   :  { %v372_v0 = vpop.eup %371  ;;  %v170_v22 = vxor.u32 2147483648, %v370_v63 }
  0x7e   :  { %v167_v1 = vxor.u32 2147483648, %v372_v0 }
  0x7f   :  { %v171_v3 = vsel %vm169_vm2, %v170_v22, %v372_v0 }
  0x80   :  { %v168_v52 = vsel %vm166_vm3, %v370_v63, %v167_v1 }
  0x81   :  { %v172_v4 = vsel %vm165_vm4, %v168_v52, %v171_v3 }
  0x82   :  { %v173_v6 = vsel %vm163_vm5, nan, %v172_v4 }
  0x83   :  { %v374_v7 = vpop.eup %373  ;;  %v278_v11 = vmul.f32 %v277_v8, %v173_v6 }
  0x84   :  { %v376_v9 = vpop.eup %375  ;;  %v273_v10 = vxor.u32 2147483648, %v374_v7 }
  0x85   :  { %v270_v12 = vxor.u32 2147483648, %v376_v9  ;;  %v281_v15 = vadd.f32 %v280_v40, %v278_v11 }
  0x86   :  { %v274_v18 = vsel %vm272_vm6, %v273_v10, %v376_v9 }
  0x87   :  { %v271_v13 = vsel %vm269_vm7, %v374_v7, %v270_v12  ;;  %v283_v28 = vsub.f32 %v525_v16, %v281_v15  ;;  %v296_v29 = vmul.f32 %v295_v24, %v281_v15 }
  0x88   :  { %v275_v14 = vsel %vm268_vm8, %v271_v13, %v274_v18 }
  0x89   :  { %v276_v21 = vsel %vm266_vm9, nan, %v275_v14  ;;  %v286_v34 = vmul.f32 %v285_v30, %v283_v28  ;;  %v299_v19 = vadd.f32 %v298_v31, %v296_v29 }
  0x8a   :  { %v279_v23 = vmul.f32 %v277_v8, %v276_v21 }
  0x8c   :  { %v282_v25 = vadd.f32 %v280_v40, %v279_v23 }
  0x8e   :  { %v284_v32 = vsub.f32 %v527_v17, %v282_v25  ;;  %v297_v33 = vmul.f32 %v295_v24, %v282_v25 }
  0x90   :  { %v287_v36 = vmul.f32 %v285_v30, %v284_v32  ;;  %v300_v37 = vadd.f32 %v298_v31, %v297_v33 }
  0x92   :  { %v290_v26 = vrot.slane %v287_v36, 7  ;;  %v303_v27 = vrot.slane %v300_v37, 7 }
  0x94   :  { %v292_v35 = vsel %vm291_vm10, %v290_v26, %v286_v34  ;;  %v304_v16 = vsel %vm291_vm10, %v303_v27, %v299_v19 }
  0x95   :  { %294 = vst [vmem:[#allocation8] sm:$0x3] %v292_v35  ;;  %306 = vst [vmem:[#allocation7] sm:$0x3] %v304_v16 }
  0x96   :  { %420 = shalt.err (!%p417_p1)
}
  0x97   :  { %s421_s24 = scalar_lea.hbm %s649_s3, 32 }
  0x98   :  { %p422_p2 = scmp.ne.s32.totalorder %s649_s3, %s421_s24  ;;  %p425_p3 = scmp.lt.u32.totalorder %s421_s24, %s649_s3 }
  0x9a   :  { %p427_p4 = pnand %p425_p3, %p422_p2 }
  0x9c   :  { %430 = shalt.err (!%p427_p4)
}
  0x9d   :  { %316 = dma.vmem_to_hbm [thread:$0]  %s314_s18, 32, %s649_s3, [#allocation4]  }
  0x9e   :  { %s431_s5 = scalar_lea.vmem %s324_s20, 32  ;;  %p436_p6 = scmp.lt.s32.totalorder %s324_s20, %s324_s20 }
  0x9f   :  { %p432_p5 = scmp.ne.s32.totalorder %s324_s20, %s431_s5  ;;  %p437_p7 = scmp.lt.s32.totalorder %s431_s5, %s431_s5 }
  0xa1   :  { %p438_p8 = por %p437_p7, %p436_p6 }
  0xa3   :  { %p439_p9 = pnand %p438_p8, %p432_p5 }
  0xa5   :  { %442 = shalt.err (!%p439_p9)
}
  0xa6   :  { %s443_s8 = scalar_lea.hbm %s650_s4, 32 }
  0xa7   :  { %p444_p10 = scmp.ne.s32.totalorder %s650_s4, %s443_s8  ;;  %p447_p11 = scmp.lt.u32.totalorder %s443_s8, %s650_s4 }
  0xa9   :  { %p449_p12 = pnand %p447_p11, %p444_p10 }
  0xab   :  { %452 = shalt.err (!%p449_p12)
}
  0xac   :  { %326 = dma.vmem_to_hbm [thread:$0]  %s324_s20, 32, %s650_s4, [#allocation9]  }
  0xad   :  { %457 = dma.done.wait [#allocation4], 32  }
  0xae   :  { %458 = vsyncadd [#allocation4], 4294967264 }
  0xaf   :  { %459 = dma.done.wait [#allocation9], 32  }
  0xb0   :  { %460 = vsyncadd [#allocation9], 4294967264 }
  0xb1   :  { %333 = vsyncpa [#allocation3], 1 }
  0xb2   :  { %334 = vsyncpa [#allocation4], 1 }
  0xb3   :  { %335 = vsyncpa [#allocation9], 1 }
  0xb4   :  { %336 = vsyncpa [#allocation5], 1 }

</bundles_post_ra>
